<compile_context>
chip_gen: v7x
topology: tpu7x:2x2x1
jax: 0.10.0
libtpu: 0.0.40
codegen_flags: <defaults>
</compile_context>

<pallas_src>
import functools

import jax
import jax.numpy as jnp
from jax import lax
from jax.experimental import pallas as pl
from jax.experimental.pallas import tpu as pltpu

BN_EPS = 1e-5


# ---------------------------------------------------------------------------
# in-kernel helpers
# ---------------------------------------------------------------------------
def _conv3(x, w_ref, seg):
    """3-tap 'same' conv over every length-`seg` segment of the lane axis.

    x: (Ci, nseg*seg) (samples concatenated on lanes); w_ref: (3, Co, Ci).
    Returns (Co, nseg*seg) f32.  Shifted copies are built with pltpu.roll (XLU) and the
    segment-seam columns are zeroed so samples never mix.
    """
    _, W = x.shape
    col = lax.broadcasted_iota(jnp.int32, (1, W), 1)
    phase = col % seg
    zero = jnp.zeros((), x.dtype)
    xl = jnp.where(phase == 0, zero, pltpu.roll(x, shift=1, axis=1))            # x[l-1]
    xr = jnp.where(phase == seg - 1, zero, pltpu.roll(x, shift=W - 1, axis=1))  # x[l+1]
    y = jnp.dot(w_ref[1], x, preferred_element_type=jnp.float32)
    y += jnp.dot(w_ref[0], xl, preferred_element_type=jnp.float32)
    y += jnp.dot(w_ref[2], xr, preferred_element_type=jnp.float32)
    return y


def _stats(y):
    """Per-channel [sum | sum-of-squares] packed as one (C, 2) f32 tile."""
    return jnp.concatenate(
        [jnp.sum(y, axis=1, keepdims=True), jnp.sum(y * y, axis=1, keepdims=True)], axis=1)


# ---------------------------------------------------------------------------
# kernels (grid over batch blocks of B samples)
# ---------------------------------------------------------------------------
def _up_conv1_kernel(x_ref, ut_ref, w1_ref, y_ref, st_ref, *, B, L2, cdt):
    # x_ref: (B, Cin, L); ut_ref: (L, L2); w1_ref: (3, Cmid, Cin)
    pieces = [jnp.dot(x_ref[b], ut_ref[...],
                      preferred_element_type=jnp.float32).astype(cdt)
              for b in range(B)]
    xu = pieces[0] if B == 1 else jnp.concatenate(pieces, axis=1)   # (Cin, B*L2)
    y = _conv3(xu, w1_ref, L2)                                      # (Cmid, B*L2) f32
    y_ref[...] = y.astype(y_ref.dtype)
    st_ref[0] = _stats(y)


def _bn_relu_conv2_kernel(y1_ref, sc_ref, bi_ref, w2_ref, y_ref, st_ref, *, L2, cdt):
    # BN1 (fused scale/bias, f32) + ReLU, then conv2; y1_ref: (Cmid, B*L2)
    a = jnp.maximum(y1_ref[...].astype(jnp.float32) * sc_ref[...] + bi_ref[...], 0.0)
    y = _conv3(a.astype(cdt), w2_ref, L2)                           # (Cout, B*L2) f32
    y_ref[...] = y.astype(y_ref.dtype)
    st_ref[0] = _stats(y)


# ---------------------------------------------------------------------------
# wrapper glue
# ---------------------------------------------------------------------------
def _linear_upsample_matrix(L, L2):
    """U[o, l] s.t. upsampled[o] = sum_l U[o, l] * x[l] (linear, align_corners=True)."""
    i = jnp.arange(L2, dtype=jnp.float32)
    denom = max(L2 - 1, 1)
    src = i * (L - 1) / denom
    i0 = jnp.clip(jnp.floor(src).astype(jnp.int32), 0, L - 1)
    i1 = jnp.clip(i0 + 1, 0, L - 1)
    frac = src - i0.astype(jnp.float32)
    rows = jnp.arange(L2)
    U = jnp.zeros((L2, L), jnp.float32)
    U = U.at[rows, i0].add(1.0 - frac)
    U = U.at[rows, i1].add(frac)
    return U


def _bn_scale_bias(stats, gamma, beta, count):
    """Combine per-block f32 sums into train-mode BN fused scale/bias (biased variance)."""
    s = jnp.sum(stats[:, :, 0], axis=0)
    q = jnp.sum(stats[:, :, 1], axis=0)
    mean = s / count
    var = jnp.maximum(q / count - mean * mean, 0.0)   # f32 sums; clamp guards cancellation
    inv = lax.rsqrt(var + BN_EPS)
    scale = gamma * inv
    bias = beta - mean * scale
    return scale.reshape(-1, 1), bias.reshape(-1, 1)


def _pick_block_n(N, L2, target):
    """Largest divisor d of N (<= target) with d*L2 a multiple of 128 (lane-dense blocks)."""
    best = None
    for d in range(1, min(target, N) + 1):
        if N % d == 0 and (d * L2) % 128 == 0:
            best = d
    return best if best is not None else N   # fallback: full-extent blocks (always legal)


def up_forward(x, params, *, block_n=8, compute_dtype=jnp.bfloat16):
    """x: (N, Cin, L) f32, params in PyTorch shapes -> (N, Cout, 2*L) f32."""
    w1, g1, b1, w2, g2, b2 = params              # w: (Co, Ci, 3); g/b: (C,)
    N, Cin, L = x.shape
    L2 = 2 * L
    Cmid, Cout = w1.shape[0], w2.shape[0]
    cdt = compute_dtype
    f32 = jnp.float32

    B = _pick_block_n(N, L2, block_n)
    nblk = N // B

    x_c = x.astype(cdt)                                            # (N, Cin, L)
    ut = _linear_upsample_matrix(L, L2).T.astype(cdt)              # (L, L2)
    w1t = jnp.transpose(w1, (2, 0, 1)).astype(cdt)                 # (3, Cmid, Cin)
    w2t = jnp.transpose(w2, (2, 0, 1)).astype(cdt)                 # (3, Cout, Cmid)

    cparams = pltpu.CompilerParams(
        dimension_semantics=("parallel",),
        vmem_limit_bytes=48 * 1024 * 1024)       # explicit budget (fits v7x 64 MiB physical)

    def inv_spec(shape):                          # grid-invariant operand (stays resident)
        nd = len(shape)
        return pl.BlockSpec(shape, lambda n, _nd=nd: (0,) * _nd)

    bpe = jnp.dtype(cdt).itemsize

    # ---- pass 1: upsample + conv1 (+ packed per-block BN1 sums) ----
    k1 = functools.partial(_up_conv1_kernel, B=B, L2=L2, cdt=cdt)
    flops1 = int(N * (2 * Cin * L * L2 + 3 * 2 * Cmid * Cin * L2))
    bytes1 = int(bpe * (N * Cin * L + L * L2 + 3 * Cmid * Cin + Cmid * N * L2)
                 + 4 * nblk * Cmid * 2)
    y1, st1 = pl.pallas_call(
        k1,
        grid=(nblk,),
        in_specs=[pl.BlockSpec((B, Cin, L), lambda n: (n, 0, 0)),
                  inv_spec((L, L2)),
                  inv_spec((3, Cmid, Cin))],
        out_specs=(pl.BlockSpec((Cmid, B * L2), lambda n: (0, n)),
                   pl.BlockSpec((1, Cmid, 2), lambda n: (n, 0, 0))),
        out_shape=(jax.ShapeDtypeStruct((Cmid, N * L2), cdt),
                   jax.ShapeDtypeStruct((nblk, Cmid, 2), f32)),
        compiler_params=cparams,
        cost_estimate=pl.CostEstimate(flops=flops1, transcendentals=0,
                                      bytes_accessed=bytes1),
    )(x_c, ut, w1t)

    sc1, bi1 = _bn_scale_bias(st1, g1, b1, N * L2)

    # ---- pass 2: BN1 + ReLU + conv2 (+ packed per-block BN2 sums) ----
    k2 = functools.partial(_bn_relu_conv2_kernel, L2=L2, cdt=cdt)
    flops2 = int(N * (3 * 2 * Cout * Cmid * L2 + 4 * Cmid * L2))
    bytes2 = int(bpe * (Cmid * N * L2 + 3 * Cout * Cmid + Cout * N * L2)
                 + 4 * (4 * Cmid + nblk * Cout * 2))
    y2, st2 = pl.pallas_call(
        k2,
        grid=(nblk,),
        in_specs=[pl.BlockSpec((Cmid, B * L2), lambda n: (0, n)),
                  inv_spec((Cmid, 1)),
                  inv_spec((Cmid, 1)),
                  inv_spec((3, Cout, Cmid))],
        out_specs=(pl.BlockSpec((Cout, B * L2), lambda n: (0, n)),
                   pl.BlockSpec((1, Cout, 2), lambda n: (n, 0, 0))),
        out_shape=(jax.ShapeDtypeStruct((Cout, N * L2), cdt),
                   jax.ShapeDtypeStruct((nblk, Cout, 2), f32)),
        compiler_params=cparams,
        cost_estimate=pl.CostEstimate(flops=flops2, transcendentals=0,
                                      bytes_accessed=bytes2),
    )(y1, sc1, bi1, w2t)

    sc2, bi2 = _bn_scale_bias(st2, g2, b2, N * L2)

    # ---- BN2 + ReLU epilogue in plain JAX (XLA fuses it into the layout restore) ----
    out = jnp.maximum(y2.astype(f32) * sc2 + bi2, 0.0)             # (Cout, N*L2)
    return out.reshape(Cout, N, L2).transpose(1, 0, 2)             # (N, Cout, L2)


# ---------------------------------------------------------------------------
# pure-JAX reference of Up.forward (train-mode BN), NCL layout
# ---------------------------------------------------------------------------
def up_reference(x, params):
    w1, g1, b1, w2, g2, b2 = params
    N, Cin, L = x.shape
    L2 = 2 * L
    U = _linear_upsample_matrix(L, L2)
    xu = jnp.einsum('ncl,ol->nco', x, U, precision=lax.Precision.HIGHEST)

    def conv(a, w):
        return lax.conv_general_dilated(
            a, w, window_strides=(1,), padding=((1, 1),),
            dimension_numbers=('NCH', 'OIH', 'NCH'),
            precision=lax.Precision.HIGHEST)

    def bn_relu(y, g, b):
        m = y.mean(axis=(0, 2), keepdims=True)
        v = ((y - m) ** 2).mean(axis=(0, 2), keepdims=True)
        yn = (y - m) / jnp.sqrt(v + BN_EPS)
        return jnp.maximum(yn * g[None, :, None] + b[None, :, None], 0.0)

    h = bn_relu(conv(xu, w1), g1, b1)
    h = bn_relu(conv(h, w2), g2, b2)
    return h


if __name__ == "__main__":
    key = jax.random.PRNGKey(0)
    N, Cin, Cout, L = 16, 8, 8, 16          # Up(in_channels=8, out_channels=8); 2 grid steps
    Cmid = Cin // 2
    ks = jax.random.split(key, 7)

    x = jax.random.normal(ks[0], (N, Cin, L), jnp.float32)
    w1 = jax.random.normal(ks[1], (Cmid, Cin, 3), jnp.float32) * 0.2
    g1 = 1.0 + 0.1 * jax.random.normal(ks[2], (Cmid,), jnp.float32)
    b1 = 0.1 * jax.random.normal(ks[3], (Cmid,), jnp.float32)
    w2 = jax.random.normal(ks[4], (Cout, Cmid, 3), jnp.float32) * 0.2
    g2 = 1.0 + 0.1 * jax.random.normal(ks[5], (Cout,), jnp.float32)
    b2 = 0.1 * jax.random.normal(ks[6], (Cout,), jnp.float32)
    params = (w1, g1, b1, w2, g2, b2)

    ref = up_reference(x, params)

    # exact-math validation path (same kernels, f32 operands end to end)
    out_f32 = jax.block_until_ready(up_forward(x, params, compute_dtype=jnp.float32))
    assert out_f32.shape == (N, Cout, 2 * L), out_f32.shape
    err32 = float(jnp.max(jnp.abs(out_f32 - ref)))
    assert jnp.allclose(out_f32, ref, atol=2e-3, rtol=2e-3), f"f32 max abs err = {err32}"

    # performance path: bf16 matmul operands + bf16 HBM intermediates (f32 accumulation);
    # loose tolerance only reflects bf16 quantization of inputs/weights, logic checked above.
    out_bf16 = jax.block_until_ready(up_forward(x, params, compute_dtype=jnp.bfloat16))
    assert out_bf16.shape == (N, Cout, 2 * L), out_bf16.shape
    errbf = float(jnp.max(jnp.abs(out_bf16 - ref)))
    assert jnp.allclose(out_bf16, ref, atol=1e-1, rtol=1e-1), f"bf16 max abs err = {errbf}"

    print("KERNEL_OK")
</pallas_src>

<mosaic_0001>
module attributes {stable_mosaic.version = 11 : i64} {
  func.func @_up_conv1_kernel(%arg0: i32, %arg1: memref<8x8x16xf32, #tpu.memory_space<vmem>>, %arg2: memref<16x32xf32, #tpu.memory_space<vmem>>, %arg3: memref<3x4x8xf32, #tpu.memory_space<vmem>>, %arg4: memref<4x256xf32, #tpu.memory_space<vmem>>, %arg5: memref<1x4x2xf32, #tpu.memory_space<vmem>>) attributes {dimension_semantics = [#tpu.dimension_semantics<parallel>], iteration_bounds = array<i64: 2>, scalar_prefetch = 0 : i64, scratch_operands = 0 : i64, tpu.core_type = #tpu.core_type<tc>, window_params = [{transform_indices = @transform_0, window_bounds = array<i64: 8, 8, 16>}, {pipeline_mode = #tpu.pipeline_mode<synchronous>, transform_indices = @transform_1, window_bounds = array<i64: 16, 32>}, {pipeline_mode = #tpu.pipeline_mode<synchronous>, transform_indices = @transform_2, window_bounds = array<i64: 3, 4, 8>}, {transform_indices = @transform_3, window_bounds = array<i64: 4, 256>}, {transform_indices = @transform_4, window_bounds = array<i64: 1, 4, 2>}]} {
    %c0 = arith.constant 0 : index
    %c0_0 = arith.constant 0 : index
    %c0_1 = arith.constant 0 : index
    %0 = vector.load %arg1[%c0, %c0_0, %c0_1] : memref<8x8x16xf32, #tpu.memory_space<vmem>>, vector<1x8x16xf32>
    %1 = vector.shape_cast %0 : vector<1x8x16xf32> to vector<8x16xf32>
    %c0_2 = arith.constant 0 : index
    %c0_3 = arith.constant 0 : index
    %2 = vector.load %arg2[%c0_2, %c0_3] : memref<16x32xf32, #tpu.memory_space<vmem>>, vector<16x32xf32>
    %cst = arith.constant dense<0.000000e+00> : vector<8x32xf32>
    %3 = tpu.matmul %1, %2, %cst {dimension_numbers = #tpu.dot_dimension_numbers<[1], [0], [0], [1], [0, 0, 1, 1], [], []>} : vector<8x16xf32>, vector<16x32xf32>, vector<8x32xf32> -> vector<8x32xf32>
    %c1 = arith.constant 1 : index
    %c0_4 = arith.constant 0 : index
    %c0_5 = arith.constant 0 : index
    %4 = vector.load %arg1[%c1, %c0_4, %c0_5] : memref<8x8x16xf32, #tpu.memory_space<vmem>>, vector<1x8x16xf32>
    %5 = vector.shape_cast %4 : vector<1x8x16xf32> to vector<8x16xf32>
    %c0_6 = arith.constant 0 : index
    %c0_7 = arith.constant 0 : index
    %6 = vector.load %arg2[%c0_6, %c0_7] : memref<16x32xf32, #tpu.memory_space<vmem>>, vector<16x32xf32>
    %cst_8 = arith.constant dense<0.000000e+00> : vector<8x32xf32>
    %7 = tpu.matmul %5, %6, %cst_8 {dimension_numbers = #tpu.dot_dimension_numbers<[1], [0], [0], [1], [0, 0, 1, 1], [], []>} : vector<8x16xf32>, vector<16x32xf32>, vector<8x32xf32> -> vector<8x32xf32>
    %c2 = arith.constant 2 : index
    %c0_9 = arith.constant 0 : index
    %c0_10 = arith.constant 0 : index
    %8 = vector.load %arg1[%c2, %c0_9, %c0_10] : memref<8x8x16xf32, #tpu.memory_space<vmem>>, vector<1x8x16xf32>
    %9 = vector.shape_cast %8 : vector<1x8x16xf32> to vector<8x16xf32>
    %c0_11 = arith.constant 0 : index
    %c0_12 = arith.constant 0 : index
    %10 = vector.load %arg2[%c0_11, %c0_12] : memref<16x32xf32, #tpu.memory_space<vmem>>, vector<16x32xf32>
    %cst_13 = arith.constant dense<0.000000e+00> : vector<8x32xf32>
    %11 = tpu.matmul %9, %10, %cst_13 {dimension_numbers = #tpu.dot_dimension_numbers<[1], [0], [0], [1], [0, 0, 1, 1], [], []>} : vector<8x16xf32>, vector<16x32xf32>, vector<8x32xf32> -> vector<8x32xf32>
    %c3 = arith.constant 3 : index
    %c0_14 = arith.constant 0 : index
    %c0_15 = arith.constant 0 : index
    %12 = vector.load %arg1[%c3, %c0_14, %c0_15] : memref<8x8x16xf32, #tpu.memory_space<vmem>>, vector<1x8x16xf32>
    %13 = vector.shape_cast %12 : vector<1x8x16xf32> to vector<8x16xf32>
    %c0_16 = arith.constant 0 : index
    %c0_17 = arith.constant 0 : index
    %14 = vector.load %arg2[%c0_16, %c0_17] : memref<16x32xf32, #tpu.memory_space<vmem>>, vector<16x32xf32>
    %cst_18 = arith.constant dense<0.000000e+00> : vector<8x32xf32>
    %15 = tpu.matmul %13, %14, %cst_18 {dimension_numbers = #tpu.dot_dimension_numbers<[1], [0], [0], [1], [0, 0, 1, 1], [], []>} : vector<8x16xf32>, vector<16x32xf32>, vector<8x32xf32> -> vector<8x32xf32>
    %c4 = arith.constant 4 : index
    %c0_19 = arith.constant 0 : index
    %c0_20 = arith.constant 0 : index
    %16 = vector.load %arg1[%c4, %c0_19, %c0_20] : memref<8x8x16xf32, #tpu.memory_space<vmem>>, vector<1x8x16xf32>
    %17 = vector.shape_cast %16 : vector<1x8x16xf32> to vector<8x16xf32>
    %c0_21 = arith.constant 0 : index
    %c0_22 = arith.constant 0 : index
    %18 = vector.load %arg2[%c0_21, %c0_22] : memref<16x32xf32, #tpu.memory_space<vmem>>, vector<16x32xf32>
    %cst_23 = arith.constant dense<0.000000e+00> : vector<8x32xf32>
    %19 = tpu.matmul %17, %18, %cst_23 {dimension_numbers = #tpu.dot_dimension_numbers<[1], [0], [0], [1], [0, 0, 1, 1], [], []>} : vector<8x16xf32>, vector<16x32xf32>, vector<8x32xf32> -> vector<8x32xf32>
    %c5 = arith.constant 5 : index
    %c0_24 = arith.constant 0 : index
    %c0_25 = arith.constant 0 : index
    %20 = vector.load %arg1[%c5, %c0_24, %c0_25] : memref<8x8x16xf32, #tpu.memory_space<vmem>>, vector<1x8x16xf32>
    %21 = vector.shape_cast %20 : vector<1x8x16xf32> to vector<8x16xf32>
    %c0_26 = arith.constant 0 : index
    %c0_27 = arith.constant 0 : index
    %22 = vector.load %arg2[%c0_26, %c0_27] : memref<16x32xf32, #tpu.memory_space<vmem>>, vector<16x32xf32>
    %cst_28 = arith.constant dense<0.000000e+00> : vector<8x32xf32>
    %23 = tpu.matmul %21, %22, %cst_28 {dimension_numbers = #tpu.dot_dimension_numbers<[1], [0], [0], [1], [0, 0, 1, 1], [], []>} : vector<8x16xf32>, vector<16x32xf32>, vector<8x32xf32> -> vector<8x32xf32>
    %c6 = arith.constant 6 : index
    %c0_29 = arith.constant 0 : index
    %c0_30 = arith.constant 0 : index
    %24 = vector.load %arg1[%c6, %c0_29, %c0_30] : memref<8x8x16xf32, #tpu.memory_space<vmem>>, vector<1x8x16xf32>
    %25 = vector.shape_cast %24 : vector<1x8x16xf32> to vector<8x16xf32>
    %c0_31 = arith.constant 0 : index
    %c0_32 = arith.constant 0 : index
    %26 = vector.load %arg2[%c0_31, %c0_32] : memref<16x32xf32, #tpu.memory_space<vmem>>, vector<16x32xf32>
    %cst_33 = arith.constant dense<0.000000e+00> : vector<8x32xf32>
    %27 = tpu.matmul %25, %26, %cst_33 {dimension_numbers = #tpu.dot_dimension_numbers<[1], [0], [0], [1], [0, 0, 1, 1], [], []>} : vector<8x16xf32>, vector<16x32xf32>, vector<8x32xf32> -> vector<8x32xf32>
    %c7 = arith.constant 7 : index
    %c0_34 = arith.constant 0 : index
    %c0_35 = arith.constant 0 : index
    %28 = vector.load %arg1[%c7, %c0_34, %c0_35] : memref<8x8x16xf32, #tpu.memory_space<vmem>>, vector<1x8x16xf32>
    %29 = vector.shape_cast %28 : vector<1x8x16xf32> to vector<8x16xf32>
    %c0_36 = arith.constant 0 : index
    %c0_37 = arith.constant 0 : index
    %30 = vector.load %arg2[%c0_36, %c0_37] : memref<16x32xf32, #tpu.memory_space<vmem>>, vector<16x32xf32>
    %cst_38 = arith.constant dense<0.000000e+00> : vector<8x32xf32>
    %31 = tpu.matmul %29, %30, %cst_38 {dimension_numbers = #tpu.dot_dimension_numbers<[1], [0], [0], [1], [0, 0, 1, 1], [], []>} : vector<8x16xf32>, vector<16x32xf32>, vector<8x32xf32> -> vector<8x32xf32>
    %32 = tpu.concatenate %3, %7, %11, %15, %19, %23, %27, %31 in 1 : vector<8x32xf32>, vector<8x32xf32>, vector<8x32xf32>, vector<8x32xf32>, vector<8x32xf32>, vector<8x32xf32>, vector<8x32xf32>, vector<8x32xf32> -> vector<8x256xf32>
    %33 = tpu.iota {dimensions = array<i32: 1>} : vector<1x256xi32>
    %c32_i32 = arith.constant 32 : i32
    %c0_i32 = arith.constant 0 : i32
    %34 = arith.cmpi eq, %c32_i32, %c0_i32 : i32
    %c1_i32 = arith.constant 1 : i32
    %35 = arith.select %34, %c1_i32, %c32_i32 : i32
    %36 = vector.broadcast %35 : i32 to vector<1x256xi32>
    %37 = arith.remsi %33, %36 : vector<1x256xi32>
    %c0_i32_39 = arith.constant 0 : i32
    %38 = vector.broadcast %c0_i32_39 : i32 to vector<1x256xi32>
    %39 = arith.cmpi ne, %37, %38 : vector<1x256xi32>
    %c0_i32_40 = arith.constant 0 : i32
    %40 = vector.broadcast %c0_i32_40 : i32 to vector<1x256xi32>
    %41 = arith.cmpi slt, %37, %40 : vector<1x256xi32>
    %c0_i32_41 = arith.constant 0 : i32
    %42 = arith.cmpi slt, %35, %c0_i32_41 : i32
    %43 = vector.broadcast %42 : i1 to vector<1x256xi1>
    %44 = vector.broadcast %43 : vector<1x256xi1> to vector<1x256xi1>
    %45 = arith.xori %41, %44 : vector<1x256xi1>
    %46 = arith.andi %45, %39 : vector<1x256xi1>
    %47 = vector.broadcast %35 : i32 to vector<1x256xi32>
    %48 = arith.addi %37, %47 : vector<1x256xi32>
    %49 = arith.select %46, %48, %37 : vector<1x256xi1>, vector<1x256xi32>
    %c0_i32_42 = arith.constant 0 : i32
    %50 = vector.broadcast %c0_i32_42 : i32 to vector<1x256xi32>
    %51 = arith.cmpi eq, %49, %50 : vector<1x256xi32>
    %c1_i32_43 = arith.constant 1 : i32
    %52 = tpu.dynamic_rotate %32 by %c1_i32_43 dim 1 : vector<8x256xf32>, i32 -> vector<8x256xf32>
    %cst_44 = arith.constant 0.000000e+00 : f32
    %53 = vector.shape_cast %51 : vector<1x256xi1> to vector<1x256xi1>
    %54 = vector.broadcast %53 : vector<1x256xi1> to vector<8x256xi1>
    %55 = vector.broadcast %cst_44 : f32 to vector<8x256xf32>
    %56 = arith.select %54, %55, %52 : vector<8x256xi1>, vector<8x256xf32>
    %c31_i32 = arith.constant 31 : i32
    %57 = vector.broadcast %c31_i32 : i32 to vector<1x256xi32>
    %58 = arith.cmpi eq, %49, %57 : vector<1x256xi32>
    %c255_i32 = arith.constant 255 : i32
    %59 = tpu.dynamic_rotate %32 by %c255_i32 dim 1 : vector<8x256xf32>, i32 -> vector<8x256xf32>
    %cst_45 = arith.constant 0.000000e+00 : f32
    %60 = vector.shape_cast %58 : vector<1x256xi1> to vector<1x256xi1>
    %61 = vector.broadcast %60 : vector<1x256xi1> to vector<8x256xi1>
    %62 = vector.broadcast %cst_45 : f32 to vector<8x256xf32>
    %63 = arith.select %61, %62, %59 : vector<8x256xi1>, vector<8x256xf32>
    %c1_46 = arith.constant 1 : index
    %c0_47 = arith.constant 0 : index
    %c0_48 = arith.constant 0 : index
    %64 = vector.load %arg3[%c1_46, %c0_47, %c0_48] : memref<3x4x8xf32, #tpu.memory_space<vmem>>, vector<1x4x8xf32>
    %65 = vector.shape_cast %64 : vector<1x4x8xf32> to vector<4x8xf32>
    %cst_49 = arith.constant dense<0.000000e+00> : vector<4x256xf32>
    %66 = tpu.matmul %65, %32, %cst_49 {dimension_numbers = #tpu.dot_dimension_numbers<[1], [0], [0], [1], [0, 0, 1, 1], [], []>} : vector<4x8xf32>, vector<8x256xf32>, vector<4x256xf32> -> vector<4x256xf32>
    %c0_50 = arith.constant 0 : index
    %c0_51 = arith.constant 0 : index
    %c0_52 = arith.constant 0 : index
    %67 = vector.load %arg3[%c0_50, %c0_51, %c0_52] : memref<3x4x8xf32, #tpu.memory_space<vmem>>, vector<1x4x8xf32>
    %68 = vector.shape_cast %67 : vector<1x4x8xf32> to vector<4x8xf32>
    %cst_53 = arith.constant dense<0.000000e+00> : vector<4x256xf32>
    %69 = tpu.matmul %68, %56, %cst_53 {dimension_numbers = #tpu.dot_dimension_numbers<[1], [0], [0], [1], [0, 0, 1, 1], [], []>} : vector<4x8xf32>, vector<8x256xf32>, vector<4x256xf32> -> vector<4x256xf32>
    %70 = arith.addf %66, %69 : vector<4x256xf32>
    %c2_54 = arith.constant 2 : index
    %c0_55 = arith.constant 0 : index
    %c0_56 = arith.constant 0 : index
    %71 = vector.load %arg3[%c2_54, %c0_55, %c0_56] : memref<3x4x8xf32, #tpu.memory_space<vmem>>, vector<1x4x8xf32>
    %72 = vector.shape_cast %71 : vector<1x4x8xf32> to vector<4x8xf32>
    %cst_57 = arith.constant dense<0.000000e+00> : vector<4x256xf32>
    %73 = tpu.matmul %72, %63, %cst_57 {dimension_numbers = #tpu.dot_dimension_numbers<[1], [0], [0], [1], [0, 0, 1, 1], [], []>} : vector<4x8xf32>, vector<8x256xf32>, vector<4x256xf32> -> vector<4x256xf32>
    %74 = arith.addf %70, %73 : vector<4x256xf32>
    %c0_58 = arith.constant 0 : index
    %c0_59 = arith.constant 0 : index
    %75 = vector.load %arg4[%c0_58, %c0_59] : memref<4x256xf32, #tpu.memory_space<vmem>>, vector<4x256xf32>
    tpu.vector_store %arg4[%c0_58, %c0_59], %74 {strides = array<i32>} : memref<4x256xf32, #tpu.memory_space<vmem>>, vector<4x256xf32>,
    %cst_60 = arith.constant dense<0.000000e+00> : vector<4xf32>
    %76 = vector.multi_reduction <add>, %74, %cst_60 [1] : vector<4x256xf32> to vector<4xf32>
    %77 = vector.shape_cast %76 : vector<4xf32> to vector<4x1xf32>
    %78 = arith.mulf %74, %74 : vector<4x256xf32>
    %cst_61 = arith.constant dense<0.000000e+00> : vector<4xf32>
    %79 = vector.multi_reduction <add>, %78, %cst_61 [1] : vector<4x256xf32> to vector<4xf32>
    %80 = vector.shape_cast %79 : vector<4xf32> to vector<4x1xf32>
    %81 = tpu.concatenate %77, %80 in 1 : vector<4x1xf32>, vector<4x1xf32> -> vector<4x2xf32>
    %c0_62 = arith.constant 0 : index
    %c0_63 = arith.constant 0 : index
    %c0_64 = arith.constant 0 : index
    %82 = vector.load %arg5[%c0_62, %c0_63, %c0_64] : memref<1x4x2xf32, #tpu.memory_space<vmem>>, vector<1x4x2xf32>
    %83 = vector.shape_cast %82 : vector<1x4x2xf32> to vector<4x2xf32>
    %84 = vector.shape_cast %81 : vector<4x2xf32> to vector<1x4x2xf32>
    tpu.vector_store %arg5[%c0_62, %c0_63, %c0_64], %84 {strides = array<i32>} : memref<1x4x2xf32, #tpu.memory_space<vmem>>, vector<1x4x2xf32>,
    return
  }
  func.func @transform_0(%arg0: i32) -> (i32, i32, i32) {
    %c0_i32 = arith.constant 0 : i32
    %c0_i32_0 = arith.constant 0 : i32
    %c0_i32_1 = arith.constant 0 : i32
    return %arg0, %c0_i32, %c0_i32_0 : i32, i32, i32
  }
  func.func @transform_1(%arg0: i32) -> (i32, i32) {
    %c0_i32 = arith.constant 0 : i32
    %c0_i32_0 = arith.constant 0 : i32
    %c0_i32_1 = arith.constant 0 : i32
    return %c0_i32, %c0_i32_0 : i32, i32
  }
  func.func @transform_2(%arg0: i32) -> (i32, i32, i32) {
    %c0_i32 = arith.constant 0 : i32
    %c0_i32_0 = arith.constant 0 : i32
    %c0_i32_1 = arith.constant 0 : i32
    %c0_i32_2 = arith.constant 0 : i32
    return %c0_i32, %c0_i32_0, %c0_i32_1 : i32, i32, i32
  }
  func.func @transform_3(%arg0: i32) -> (i32, i32) {
    %c0_i32 = arith.constant 0 : i32
    %c0_i32_0 = arith.constant 0 : i32
    return %c0_i32, %arg0 : i32, i32
  }
  func.func @transform_4(%arg0: i32) -> (i32, i32, i32) {
    %c0_i32 = arith.constant 0 : i32
    %c0_i32_0 = arith.constant 0 : i32
    %c0_i32_1 = arith.constant 0 : i32
    return %arg0, %c0_i32, %c0_i32_0 : i32, i32, i32
  }
}

</mosaic_0001>

<bundles_post_ra>
// kernel: tpu_custom_call.1
= control target key start
LH: loop header
LB: loop body
LE: loop exit
PB: predicated region body
PF: predicated region fallthrough
CT: control target
= control target key end

     0   :  { %10 = vsyncpa [#allocation3], 0  ;;  %s2052_s0 = inlined_call_operand.hbm [shape: f32[16,8,16], index: 0, kind: input, shape index: {}]   ;;  %s2053_s1 = inlined_call_operand.hbm [shape: f32[16,32], index: 1, kind: input, shape index: {}]   ;;  %s2054_s2 = inlined_call_operand.hbm [shape: f32[3,4,8], index: 2, kind: input, shape index: {}]   ;;  %s2055_s3 = inlined_call_operand.hbm [shape: f32[4,512], index: 3, kind: output, shape index: {0}]   ;;  %s2056_s4 = inlined_call_operand.vmem [shape: f32[2,4,2], index: 4, kind: output, shape index: {1}]  }
   0x1   :  { %12 = vsyncpa [#allocation3 + $0x1], 0 }
   0x2   :  { %13 = vsyncpa [#allocation6], 0 }
   0x3   :  { %14 = vsyncpa [#allocation4], 0 }
   0x4   :  { %16 = vsyncpa [#allocation4 + $0x1], 0  ;;  %s1774_s15 = smov 0   ;;  %s1776_s16 = smov 0  }
   0x5   :  { %s1778_s17 = smov 0   ;;  %s1780_s18 = smov 0  }
   0x6 LB: > { %s1795_s19 = sadd.s32 4294967295, %s1731_s18   ;;  %s1337_s20 = sadd.s32 4294967294, %s1731_s18   ;;  %s1731_s18 = sphi %s1780_s18, %s2076_s18   ;;  %s1727_s17 = sphi %s1778_s17, %s2075_s17   ;;  %s1723_s16 = sphi %s1776_s16, %s2074_s16   ;;  %s1719_s15 = sphi %s1774_s15, %s2073_s15  }
   0x7   : > { %p42_p0 = scmp.ne.s32.totalorder %s1723_s16, %s1719_s15  ;;  %p2057_p1 = scmp.eq.s32.totalorder %s1795_s19, 0 }
   0x8   : > { %p114_p3 = scmp.eq.s32.totalorder %s1337_s20, 1  ;;  %p1338_p5 = scmp.ge.s32.totalorder %s1731_s18, 1 }
   0x9   : > { %p1804_p4 = por %p2057_p1, %p42_p0  ;;  %p147_p7 = scmp.lt.s32.totalorder %s1731_s18, 3 }
   0xa   : > { %p1809_p6 = por %p114_p3, %p42_p0  ;;  %s1733_s24 = smov [#allocation5]  }
   0xb   : > { %s2060_s21 = scalar_select %p1804_p4, 1, 0 }
   0xc   : > { %s2061_s22 = scalar_select %p1809_p6, 1, 0 }
   0xd   : > { %p1814_p8 = pnand %p1338_p5, %p147_p7  ;;  %s159_s25 = sshll.u32 %s1733_s24, 4  ;;  %s1818_s25 = int_to_ptr.vmem [resolvable:$true] %s159_s25 }
   0xe   : > { %s1734_s27 = smov [#allocation7]   ;;  %s1575_s5 = scalar_lea.hbm %s2053_s1, 256 }
   0xf   : > { %p1508_p9 = pneg %p1814_p8  ;;  %s172_s28 = sshll.u32 %s1734_s27, 4  ;;  %s1829_s28 = int_to_ptr.vmem [resolvable:$true] %s172_s28 }
  0x10   : > { %p1576_p12 = scmp.ne.s32.totalorder %s2053_s1, %s1575_s5  ;;  %p1582_p5 = scmp.lt.u32.totalorder %s1575_s5, %s2053_s1 }
  0x11   : > { %p1825_p11 = pnand %p1508_p9, %p2057_p1 }
  0x13   : > { %p1577_p13 = pneg %p1825_p11 }
  0x15   : > { %p1578_p0 = pnand %p1577_p13, %p1576_p12 }
  0x17   : > { %p1579_p3 = pneg %p1578_p0 }
  0x19   : > { %p1584_p7 = pnand %p1582_p5, %p1579_p3 }
  0x1b   : > { %1587 = shalt.err (!%p1584_p7)
}
  0x1c   : > { %s1588_s10 = scalar_lea.vmem %s1818_s25, 256  ;;  %p1596_p2 = scmp.lt.s32.totalorder %s1818_s25, %s1818_s25 }
  0x1d   : > { %p1589_p9 = scmp.ne.s32.totalorder %s1818_s25, %s1588_s10  ;;  %p1597_p12 = scmp.lt.s32.totalorder %s1588_s10, %s1588_s10 }
  0x1f   : > { %p1591_p10 = pnand %p1589_p9, %p1577_p13  ;;  %p1598_p0 = por %p1597_p12, %p1596_p2 }
  0x21   : > { %p1592_p1 = pneg %p1591_p10 }
  0x23   : > { %p1599_p6 = pnand %p1598_p0, %p1592_p1 }
  0x25   : > { %1602 = shalt.err (!%p1599_p6)
}
  0x26   : > { %s1735_s11 = smov 128   ;;  %s1736_s12 = smov 8  }
  0x27   : > { %1511 = dma.hbm_to_vmem [thread:$0]  (!%p1825_p11), %s2053_s1, 256, %s1818_s25, [#allocation6], %s1735_s11, %s1735_s11, %s1736_s12  }
  0x28   : > { %s1603_s27 = scalar_lea.hbm %s2054_s2, 192 }
  0x29   : > { %p1604_p1 = scmp.ne.s32.totalorder %s2054_s2, %s1603_s27  ;;  %p1610_p10 = scmp.lt.u32.totalorder %s1603_s27, %s2054_s2 }
  0x2b   : > { %p1606_p2 = pnand %p1604_p1, %p1577_p13 }
  0x2d   : > { %p1607_p6 = pneg %p1606_p2 }
  0x2f   : > { %p1612_p3 = pnand %p1610_p10, %p1607_p6 }
  0x31   : > { %1615 = shalt.err (!%p1612_p3)
}
  0x32   : > { %s1616_s25 = scalar_lea.vmem %s1829_s28, 192  ;;  %p1624_p12 = scmp.lt.s32.totalorder %s1829_s28, %s1829_s28 }
  0x33   : > { %p1617_p5 = scmp.ne.s32.totalorder %s1829_s28, %s1616_s25  ;;  %p1625_p0 = scmp.lt.s32.totalorder %s1616_s25, %s1616_s25 }
  0x35   : > { %p1619_p7 = pnand %p1617_p5, %p1577_p13  ;;  %p1626_p1 = por %p1625_p0, %p1624_p12 }
  0x37   : > { %p1620_p9 = pneg %p1619_p7 }
  0x39   : > { %p1627_p2 = pnand %p1626_p1, %p1620_p9 }
  0x3b   : > { %1630 = shalt.err (!%p1627_p2)
}
  0x3c   : > { %s1737_s7 = smov 64   ;;  %s1738_s8 = smov 4  }
  0x3d   : > { %1514 = dma.hbm_to_vmem [thread:$0]  (!%p1825_p11), %s2054_s2, 192, %s1829_s28, [#allocation6], %s1737_s7, %s1737_s7, %s1738_s8  }
  0x3e   : > { %s1887_s13 = sadd.s32 1, %s1731_s18   ;;  %s29_s20 = sadd.s32 1, %s1727_s17 }
  0x3f   : > { %s26_s14 = ssub.s32 %s1731_s18, %s1887_s13  ;;  %p36_p6 = scmp.ne.s32.totalorder %s1727_s17, %s1723_s16 }
  0x40   : > { %p27_p13 = scmp.eq.s32.totalorder %s26_s14, 0  ;;  %p37_p10 = scmp.eq.s32.totalorder %s1731_s18, 0 }
  0x41   : > { %p2064_p5 = scmp.eq.s32.totalorder %s1795_s19, 1  ;;  %p1525_p9 = scmp.lt.s32.totalorder %s1731_s18, 2 }
  0x42   : > { %s1896_s24 = scalar_select %p27_p13, %s1727_s17, %s29_s20  }
  0x43   : > { %p38_p3 = por %p37_p10, %p36_p6  ;;  %p1900_p7 = por %p2064_p5, %p36_p6 }
  0x44   : > { %s186_s26 = sand.u32 1, %s1727_s17   ;;  %s1382_s28 = sshll.u32 %s1731_s18, 10 }
  0x45   : > { %s2065_s27 = scalar_select %p1900_p7, 1, 0 }
  0x46   : > { %s1342_s29 = sshll.u32 %s186_s26, 6  ;;  %s1910_s6 = scalar_lea.hbm %s2052_s0, %s1382_s28 }
  0x47   : > { %s190_s25 = scalar_lea.vmem [#allocation2], %s1342_s29  ;;  %p1914_p11 = pnand %p1525_p9, %p38_p3 }
  0x48   : > { %s197_s7 = sshll.u32 %s190_s25, 4  ;;  %s1918_s9 = scalar_lea.sflag [#allocation3], %s186_s26  ;;  %s1912_s7 = int_to_ptr.vmem [resolvable:$true] %s197_s7 }
  0x49   : > { %s1631_s10 = scalar_lea.hbm %s1910_s6, 1024  ;;  %p1633_p0 = pneg %p1914_p11 }
  0x4a   : > { %p1632_p12 = scmp.ne.s32.totalorder %s1910_s6, %s1631_s10  ;;  %s1636_s29 = scalar_lea.hbm %s2052_s0, 2048 }
  0x4b   : > { %p1637_p13 = scmp.lt.u32.totalorder %s1910_s6, %s2052_s0  ;;  %p1638_p6 = scmp.lt.u32.totalorder %s1636_s29, %s1631_s10 }
  0x4c   : > { %p1634_p1 = pnand %p1633_p0, %p1632_p12  ;;  %p1640_p3 = scmp.lt.u32.totalorder %s1631_s10, %s1910_s6 }
  0x4d   : > { %p1639_p10 = por %p1638_p6, %p1637_p13 }
  0x4e   : > { %p1635_p2 = pneg %p1634_p1 }
  0x4f   : > { %p1641_p5 = por %p1640_p3, %p1639_p10 }
  0x51   : > { %p1642_p9 = pnand %p1641_p5, %p1635_p2 }
  0x53   : > { %1645 = shalt.err (!%p1642_p9)
}
  0x54   : > { %s1646_s26 = scalar_lea.vmem %s1912_s7, 1024  ;;  %s1739_s5 = smov [#allocation2]  }
  0x55   : > { %p1647_p12 = scmp.ne.s32.totalorder %s1912_s7, %s1646_s26  ;;  %s1651_s25 = sshll.u32 %s1739_s5, 4  ;;  %s1652_s25 = int_to_ptr.vmem [resolvable:$false] %s1651_s25 }
  0x56   : > { %s1653_s14 = scalar_lea.vmem %s1652_s25, 2048  ;;  %p1654_p4 = scmp.lt.s32.totalorder %s1912_s7, %s1652_s25 }
  0x57   : > { %p1649_p1 = pnand %p1647_p12, %p1633_p0  ;;  %p1655_p13 = scmp.lt.s32.totalorder %s1653_s14, %s1646_s26 }
  0x59   : > { %p1650_p7 = pneg %p1649_p1  ;;  %p1656_p6 = por %p1655_p13, %p1654_p4 }
  0x5b   : > { %p1657_p10 = pnand %p1656_p6, %p1650_p7 }
  0x5d   : > { %1660 = shalt.err (!%p1657_p10)
}
  0x5e   : > { %1518 = dma.hbm_to_vmem [thread:$0]  (!%p1914_p11), %s1910_s6, 1024, %s1912_s7, %s1918_s9, %s1735_s11, %s1735_s11, %s1736_s12  }
  0x5f   : > { %209 = sbr.rel (%p1814_p8) target bundleno = 952 (0x3b8), region = 32  ;;  %s1952_s10 = sand.u32 (!%p1814_p8), 1, %s1723_s16  }
  0x60   : > { %s1346_s20 = sshll.u32 (!%p1814_p8), %s1952_s10, 6  ;;  %s212_s29 = scalar_lea.sflag (!%p1814_p8), [#allocation3], %s1952_s10 }
  0x61   : > { %s1956_s28 = scalar_lea.vmem (!%p1814_p8), [#allocation2], %s1346_s20  ;;  %p2067_p4 = scmp.ne.s32.totalorder (!%p1814_p8), %s2060_s21, 0 }
  0x66   : > { %1706 = dma.done.wait (%p2067_p4), %s212_s29, 1024  }
  0x67   : > { %1708 = vsyncadd (%p2067_p4), %s212_s29, 4294966272  ;;  %p2068_p7 = scmp.eq.s32.totalorder %s1795_s19, 0 }
  0x69   : > { %1710 = dma.done.wait (%p2068_p7), [#allocation6], 448   ;;  %p2069_p8 = pmov %p2068_p7 }
  0x6a   : > { %v1740_v0 = vmov 0.0|0.0   ;;  %vm1741_vm0 = vmmov 0   ;;  %v1742_v1 = vmov 0.0   ;;  %v259_v2 = vld [vmem:[#allocation5] sm:$0xff]  ;;  %v260_v3 = vld [vmem:[#allocation5 + $0x8] sm:$0xff]  ;;  %vm261_vm1 = vcmask 130048  }
  0x6b   : > { %1712 = vsyncadd (%p2069_p8), [#allocation6], 4294966848  ;;  %1468 = vmatprep.subr.bf16.mxu1 %v1740_v0  ;;  %1416 = vmatprep.mubr.msk.f32.mxu1 %vm1741_vm0, %v1742_v1  ;;  %v1469_v4 = vpack.c.bf16 %v260_v3, %v259_v2  ;;  %v258_v5 = vld [vmem:[%s1956_s28] sm:$0xff]  ;;  %v1354_v6 = vld [vmem:[%s1956_s28 + $0x10] sm:$0xff]  ;;  %s1743_s21 = smov 64   ;;  %s1744_s23 = smov 32   ;;  %v893_v41 = vlaneseq }
  0x6c   : > { %1474 = vmatprep.subr.bf16.mxu0 %v1740_v0  ;;  %1430 = vmatprep.mubr.msk.f32.mxu0 %vm1741_vm0, %v1742_v1  ;;  %v1352_v7 = vld [vmem:[%s1956_s28 + $0x8] sm:$0xff]  ;;  %v1358_v8 = vld [vmem:[%s1956_s28 + $0x20] sm:$0xff]  ;;  %v1356_v9 = vld [vmem:[%s1956_s28 + $0x18] sm:$0xff]  ;;  %s1745_s11 = smov 96   ;;  %vm884_vm2 = vcmask 261120   ;;  %vm886_vm3 = vcmask 523264  }
  0x6d   : > { %1470 = vmatpush3.bf16.msra.mxu1 %v1469_v4  ;;  %1476 = vmatpush3.bf16.msra.mxu0 %v1469_v4  ;;  %v1362_v10 = vld [vmem:[%s1956_s28 + $0x30] sm:$0xff]  ;;  %v1360_v11 = vld [vmem:[%s1956_s28 + $0x28] sm:$0xff]  ;;  %v1364_v12 = vld [vmem:[%s1956_s28 + $0x38] sm:$0xff]  ;;  %vm888_vm4 = vcmask 785408   ;;  %s1746_s12 = smov 1   ;;  %s1747_s6 = smov 127  }
  0x6e   : > { %1471 = vmatprep.subr.bf16.mxu1 %v1740_v0  ;;  %1480 = vmatprep.subr.bf16.mxu0 %v1740_v0  ;;  %v894_v42 = vand.u32 127, %v893_v41  ;;  %v952_v50 = vld [vmem:[#allocation7] sm:$0xf]  ;;  %vm953_vm8 = vcmask 64512   ;;  %v951_v54 = vld [vmem:[#allocation7 + $0x4] sm:$0xf] }
  0x6f   : > { %v1103_v56 = vld [vmem:[#allocation7 + $0x8] sm:$0xf]  ;;  %vm1185_vm12 = vcmask 1043456   ;;  %s1349_s7 = sshll.u32 %s1952_s10, 3  ;;  %s1383_s9 = sshll.u32 %s1795_s19, 7 }
  0x70   : > { %1417 = vmatmul.mubr.msk.f32.vlgmr.msra.gmra.mrb[0].mxu1 %vm261_vm1, %v258_v5  ;;  %1431 = vmatmul.mubr.msk.f32.vlgmr.msra.gmra.mrb[0].mxu0 %vm261_vm1, %v1354_v6  ;;  %v895_v43 = vadd.s32 128, %v894_v42  ;;  %v900_v45 = vand.u32 31, %v894_v42  ;;  %vm926_vm5 = vcmp.lt.s32.totalorder %v894_v42, 1  ;;  %vm941_vm9 = vcmp.lt.s32.totalorder %v894_v42, 127  ;;  %s245_s8 = scalar_lea.vmem [#allocation8], %s1349_s7  ;;  %s2009_s5 = scalar_lea.hbm %s2055_s3, %s1383_s9 }
  0x71   : > { %1473 = vmatpush3.bf16.msra.mxu1 %v1469_v4  ;;  %1423 = vmatprep.mubr.msk.f32.mxu1 %vm1741_vm0, %v1742_v1  ;;  %s1221_s25 = sshll.u32 %s245_s8, 4  ;;  %s1203_s14 = scalar_lea.sflag [#allocation4], %s1952_s10  ;;  %s1222_s25 = int_to_ptr.vmem [resolvable:$true] %s1221_s25 }
  0x72   : > { %1477 = vmatprep.subr.bf16.mxu1 %v1740_v0  ;;  %1482 = vmatpush3.bf16.msra.mxu0 %v1469_v4  ;;  %v907_v44 = vand.u32 31, %v895_v43  ;;  %vm1385_vm7 = vcmp.ne.s32.totalorder %v900_v45, 0  ;;  %vm1387_vm11 = vcmp.ne.s32.totalorder %v900_v45, 31  ;;  %s1661_s20 = scalar_lea.vmem %s1222_s25, 128  ;;  %p2070_p0 = scmp.ne.s32.totalorder %s2065_s27, 0 }
  0x73   : > { %1444 = vmatprep.mubr.msk.f32.mxu0 %vm1741_vm0, %v1742_v1  ;;  %1486 = vmatprep.subr.bf16.mxu0 %v1740_v0  ;;  %p1662_p11 = scmp.ne.s32.totalorder %s1222_s25, %s1661_s20  ;;  %s1748_s29 = smov [#allocation8]  }
  0x74   : > { %1424 = vmatmul.mubr.msk.f32.vlgmr.msra.gmra.mrb[2].mxu1 %vm261_vm1, %v1352_v7  ;;  %vm1384_vm6 = vcmp.ne.s32.totalorder %v907_v44, 0  ;;  %vm1386_vm10 = vcmp.ne.s32.totalorder %v907_v44, 31  ;;  %s1665_s28 = sshll.u32 %s1748_s29, 4  ;;  %s1666_s28 = int_to_ptr.vmem [resolvable:$false] %s1665_s28 }
  0x75   : > { %1479 = vmatpush3.bf16.msra.mxu1 %v1469_v4  ;;  %1437 = vmatprep.mubr.msk.f32.mxu1 %vm1741_vm0, %v1742_v1  ;;  %p1663_p2 = pnand %p1662_p11, %p2070_p0  ;;  %p1668_p5 = scmp.lt.s32.totalorder %s1222_s25, %s1666_s28 }
  0x76   : > { %1445 = vmatmul.mubr.msk.f32.vlgmr.msra.gmra.mrb[2].mxu0 %vm261_vm1, %v1358_v8  ;;  %1483 = vmatprep.subr.bf16.mxu1 %v1740_v0 }
  0x77   : > { %1488 = vmatpush3.bf16.msra.mxu0 %v1469_v4  ;;  %1458 = vmatprep.mubr.msk.f32.mxu0 %vm1741_vm0, %v1742_v1  ;;  %p1664_p3 = pneg %p1663_p2 }
  0x78   : > { %1438 = vmatmul.mubr.msk.f32.vlgmr.msra.gmra.mrb[4].mxu1 %vm261_vm1, %v1356_v9 }
  0x79   : > { %1485 = vmatpush3.bf16.msra.mxu1 %v1469_v4  ;;  %1451 = vmatprep.mubr.msk.f32.mxu1 %vm1741_vm0, %v1742_v1 }
  0x7a   : > { %1459 = vmatmul.mubr.msk.f32.vlgmr.msra.gmra.mrb[4].mxu0 %vm261_vm1, %v1362_v10  ;;  %1489 = vmatprep.subr.bf16.mxu1 %v1740_v0 }
  0x7b   : > { %1021 = vmatprep.mubr.f32.mxu0 %v1742_v1 }
  0x7c   : > { %1452 = vmatmul.mubr.msk.f32.vlgmr.msra.gmra.mrb[6].mxu1 %vm261_vm1, %v1360_v11 }
  0x7d   : > { %1491 = vmatpush3.bf16.msra.mxu1 %v1469_v4  ;;  %1465 = vmatprep.mubr.msk.f32.mxu1 %vm1741_vm0, %v1742_v1 }
  0x80   : > { %1466 = vmatmul.mubr.msk.f32.vlgmr.msra.gmra.mrb[8].mxu1 %vm261_vm1, %v1364_v12 }
 0x143   : > { %v331_v13 = vpop.f32.mrb[0].mxu1  ;;  %v481_v14 = vpop.f32.mrb[0].mxu0 }
 0x144   : > { %v1418_v15 = vpop.f32.mrb[1].mxu1  ;;  %v1432_v16 = vpop.f32.mrb[1].mxu0  ;;  %865 = vrot.lane.b32.xlu1 %v481_v14, %s1743_s21 }
 0x147   : > { %v406_v17 = vpop.f32.mrb[2].mxu1 }
 0x148   : > { %861 = vrot.lane.b32.xlu0 %v406_v17, %s1744_s23  ;;  %v1425_v18 = vpop.f32.mrb[3].mxu1 }
 0x149   : > { %v631_v19 = vpop.f32.mrb[2].mxu0 }
 0x14a   : > { %v1446_v20 = vpop.f32.mrb[3].mxu0 }
 0x14b   : > { %v556_v21 = vpop.f32.mrb[4].mxu1 }
 0x14c   : > { %v1439_v22 = vpop.f32.mrb[5].mxu1 }
 0x14d   : > { %v781_v23 = vpop.f32.mrb[4].mxu0 }
 0x14e   : > { %v1460_v24 = vpop.f32.mrb[5].mxu0  ;;  %877 = vrot.lane.b32.xlu1 %v781_v23, %s1743_s21  ;;  %s1667_s21 = scalar_lea.vmem %s1666_s28, 256 }
 0x14f   : > { %v706_v25 = vpop.f32.mrb[6].mxu1  ;;  %p1669_p9 = scmp.lt.s32.totalorder %s1667_s21, %s1661_s20 }
 0x150   : > { %873 = vrot.lane.b32.xlu0 %v706_v25, %s1744_s23  ;;  %v1453_v26 = vpop.f32.mrb[7].mxu1 }
 0x151   : > { %p1670_p12 = por %p1669_p9, %p1668_p5 }
 0x153   : > { %v856_v27 = vpop.f32.mrb[8].mxu1  ;;  %p1671_p1 = pnand %p1670_p12, %p1664_p3 }
 0x154   : > { %869 = vrot.lane.b32.xlu0 %v556_v21, %s1745_s11  ;;  %881 = vrot.lane.b32.xlu1 %v856_v27, %s1745_s11  ;;  %v1467_v28 = vpop.f32.mrb[9].mxu1 }
 0x1b6   : > { %v866_v29 = vpop.permute.xlu1 %865 }
 0x1ba   : > { %v862_v30 = vpop.permute.xlu0 %861 }
 0x1bb   : > { %v885_v33 = vsel %vm884_vm2, %v331_v13, %v862_v30 }
 0x1bc   : > { %v887_v37 = vsel %vm886_vm3, %v885_v33, %v866_v29 }
 0x1c0   : > { %v878_v31 = vpop.permute.xlu1 %877 }
 0x1c2   : > { %v874_v32 = vpop.permute.xlu0 %873 }
 0x1c3   : > { %v890_v34 = vsel %vm884_vm2, %v631_v19, %v874_v32 }
 0x1c4   : > { %v891_v38 = vsel %vm886_vm3, %v890_v34, %v878_v31 }
 0x1c6   : > { %v870_v35 = vpop.permute.xlu0 %869  ;;  %v882_v36 = vpop.permute.xlu1 %881 }
 0x1c7   : > { %v889_v39 = vsel %vm888_vm4, %v887_v37, %v870_v35  ;;  %v892_v40 = vsel %vm888_vm4, %v891_v38, %v882_v36 }
 0x1c8   : > { %922 = vrot.lane.b32.xlu0 %v889_v39, %s1746_s12  ;;  %924 = vrot.lane.b32.xlu1 %v892_v40, %s1746_s12 }
 0x1cc   : > { %937 = vrot.lane.b32.xlu0 %v889_v39, %s1747_s6  ;;  %939 = vrot.lane.b32.xlu1 %v892_v40, %s1747_s6 }
 0x23a   : > { %v923_v46 = vpop.permute.xlu0 %922  ;;  %v925_v47 = vpop.permute.xlu1 %924 }
 0x23b   : > { %v927_v48 = vsel %vm926_vm5, %v923_v46, %v925_v47  ;;  %v928_v49 = vsel %vm926_vm5, %v925_v47, %v923_v46 }
 0x23c   : > { %1367 = vmatprep.subr.msk.mxu0 %vm1384_vm6, %v927_v48 }
 0x23d   : > { %1369 = vmatpush1.msk.msra.mxu0 %vm1385_vm7, %v928_v49 }
 0x23e   : > { %v938_v51 = vpop.permute.xlu0 %937  ;;  %1370 = vmatmul.mubr.msk.f32.vlgmr.msra.gmra.mrb[6].mxu0 %vm953_vm8, %v952_v50  ;;  %1031 = vmatprep.subr.mxu0 %v892_v40  ;;  %v940_v52 = vpop.permute.xlu1 %939 }
 0x23f   : > { %v943_v53 = vsel %vm941_vm9, %v940_v52, %v938_v51  ;;  %1032 = vmatpush1.msra.mxu0 %v889_v39  ;;  %1095 = vmatprep.mubr.f32.mxu0 %v1742_v1  ;;  %v942_v55 = vsel %vm941_vm9, %v938_v51, %v940_v52 }
 0x240   : > { %1373 = vmatprep.subr.msk.mxu0 %vm1386_vm10, %v943_v53 }
 0x246   : > { %1371 = vmatmul.mubr.msk.f32.vlgmr.msra.gmra.mrb[6].mxu0 %vm953_vm8, %v951_v54 }
 0x247   : > { %1375 = vmatpush1.msk.msra.mxu0 %vm1387_vm11, %v942_v55  ;;  %1171 = vmatprep.mubr.f32.mxu0 %v1742_v1 }
 0x24e   : > { %1376 = vmatmul.mubr.msk.f32.vlgmr.msra.gmra.mrb[6].mxu0 %vm953_vm8, %v1103_v56 }
 0x321   : > { %v1173_v57 = vpop.f32.mrb[6].mxu0 }
 0x322   : > { %v1191_v58 = vmul.f32 %v1173_v57, %v1173_v57  ;;  %v1175_v59 = vpop.f32.mrb[7].mxu0  ;;  %v1186_v60 = vsel %vm1185_vm12, %v1173_v57, 0.0 }
 0x323   : > { %v1182_v61 = vcombine.low %v1173_v57, %v1175_v59  ;;  %v1187_v62 = vsel %vm1185_vm12, %v1175_v59, 0.0  ;;  %v1192_v63 = vmul.f32 %v1175_v59, %v1175_v59 }
 0x324   : > { %v1188_v0 = vadd.f32 %v1187_v62, %v1186_v60  ;;  %v1193_v2 = vsel %vm1185_vm12, %v1191_v58, 0.0 }
 0x325   : > { %v1194_v3 = vsel %vm1185_vm12, %v1192_v63, 0.0  ;;  %1184 = vst [vmem:[%s245_s8] sm:$0xff] %v1182_v61 }
 0x326   : > { %1189 = vadd.xlane.f32.xlu0 %v1188_v0  ;;  %v1195_v1 = vadd.f32 %v1194_v3, %v1193_v2 }
 0x328   : > { %1196 = vadd.xlane.f32.xlu1 %v1195_v1 }
 0x329   : > { %1674 = shalt.err (!%p1671_p1)
}
 0x32a   : > { %s1675_s10 = scalar_lea.hbm %s2009_s5, 128  ;;  %s1679_s12 = scalar_lea.hbm %s2055_s3, 256 }
 0x32b   : > { %p1676_p13 = scmp.ne.s32.totalorder %s2009_s5, %s1675_s10  ;;  %p1680_p4 = scmp.lt.u32.totalorder %s2009_s5, %s2055_s3 }
 0x32c   : > { %p1681_p7 = scmp.lt.u32.totalorder %s1679_s12, %s1675_s10  ;;  %p1683_p11 = scmp.lt.u32.totalorder %s1675_s10, %s2009_s5 }
 0x32d   : > { %p1677_p6 = pnand %p1676_p13, %p2070_p0 }
 0x32e   : > { %p1682_p8 = por %p1681_p7, %p1680_p4 }
 0x32f   : > { %p1678_p10 = pneg %p1677_p6 }
 0x330   : > { %p1684_p2 = por %p1683_p11, %p1682_p8 }
 0x332   : > { %p1685_p3 = pnand %p1684_p2, %p1678_p10 }
 0x334   : > { %1688 = shalt.err (!%p1685_p3)
}
 0x335   : > { %1506 = dma.vmem_to_hbm [thread:$0]  (%p2070_p0), %s1222_s25, 128, %s2009_s5, %s1203_s14   ;;  %vm1198_vm13 = vcmask 7168   ;;  %vm1200_vm14 = vcmask 11264  }
 0x336   : > { %p254_p5 = scmp.lt.s32.totalorder %s1795_s19, 1 }
 0x338   : > { %s2078_s19 = smov (!%p254_p5, %s1795_s19), 1 }
 0x339   : > { %s1350_s8 = sshll.u32 %s2078_s19, 2 }
 0x33a   : > { %s257_s26 = scalar_lea.vmem %s2056_s4, %s1350_s8 }
 0x3b3   : > { %v1190_v4 = vpop.xlane.xlu0 %1189 }
 0x3b5   : > { %v1197_v5 = vpop.xlane.xlu1 %1196 }
 0x3b6   : > { %v1199_v6 = vsel %vm1198_vm13, %v1190_v4, %v1197_v5 }
 0x3b7   : > { %1201 = vst.msk [vmem:[%s257_s26] sm:$0xf] %vm1200_vm14, %v1199_v6 }
 0x3b8 PF: > { %s1236_s27 = sand.u32 1, %s1719_s15   ;;  %p2071_p9 = scmp.ne.s32.totalorder %s2061_s22, 0 }
 0x3b9   : > { %p2072_p0 = scmp.ge.s32.totalorder %s1731_s18, 2  ;;  %s1237_s5 = scalar_lea.sflag [#allocation4], %s1236_s27 }
 0x3bb   : > { %p1520_p12 = pnand %p2072_p0, %p2071_p9 }
 0x3bd   : > { %1714 = dma.done.wait (!%p1520_p12), %s1237_s5, 128  }
 0x3be   : > { %1716 = vsyncadd (!%p1520_p12), %s1237_s5, 4294967168  ;;  %p19_p1 = scmp.ge.s32.totalorder %s1887_s13, 4   ;;  %s2073_s15 = smov %s1723_s16 }
 0x3bf   : > { %s2074_s16 = smov %s1727_s17  ;;  %s2075_s17 = smov %s1896_s24 }
 0x3c0   : > { %s2076_s18 = smov %s1887_s13  ;;  %21 = sbr.rel (!%p19_p1) target bundleno = 6 (0x6), region = 106 }
 0x3c7   :  { %1249 = vsyncpa [#allocation3], 1 }
 0x3c8   :  { %1251 = vsyncpa [#allocation3 + $0x1], 1 }
 0x3c9   :  { %1252 = vsyncpa [#allocation6], 1 }
 0x3ca   :  { %1253 = vsyncpa [#allocation4], 1 }
 0x3cb   :  { %1255 = vsyncpa [#allocation4 + $0x1], 1 }

</bundles_post_ra>
